<compile_context>
chip_gen: v6e
topology: v6e:2x2x1
jax: 0.10.0
libtpu: 0.0.40
codegen_flags: <defaults>
</compile_context>

<pallas_src>
import functools
import math

import jax
import jax.numpy as jnp
from jax import lax
from jax.experimental import pallas as pl
from jax.experimental.pallas import tpu as pltpu


def _round_up(x, m):
    return ((x + m - 1) // m) * m


# ---------------------------------------------------------------------------
# Pallas kernels
# ---------------------------------------------------------------------------
def conv_bn_relu_kernel(p_ref, w_ref, scale_ref, shift_ref, o_ref):
    # p_ref: (tile_g, r*Kp) bf16, w_ref: (r*Kp, r*Cout) bf16 (block-diagonal),
    # scale/shift: (1, r*Cout) f32, o_ref: (tile_g, r*Cout) f32 (lane-dense).
    acc = jnp.dot(p_ref[...], w_ref[...], preferred_element_type=jnp.float32)
    o_ref[...] = jnp.maximum(acc * scale_ref[...] + shift_ref[...], 0.0)


def maxpool_kernel(a_ref, b_ref, c_ref, d_ref, o_ref):
    # a/b/c/d are the H/W parity quadrants of the zero-padded, channels-last
    # conv output for one (n, t) frame.  The 3x3 stride-2 window is exactly the
    # 9 plain (offset 0/1) sub-blocks below -- no strided in-kernel access.
    _, ho2, wo2, _ = o_ref.shape
    taps = [
        a_ref[0, pl.ds(0, ho2), pl.ds(0, wo2), :],   # (2h,   2w)
        a_ref[0, pl.ds(0, ho2), pl.ds(1, wo2), :],   # (2h,   2w+2)
        a_ref[0, pl.ds(1, ho2), pl.ds(0, wo2), :],   # (2h+2, 2w)
        a_ref[0, pl.ds(1, ho2), pl.ds(1, wo2), :],   # (2h+2, 2w+2)
        b_ref[0, pl.ds(0, ho2), pl.ds(0, wo2), :],   # (2h,   2w+1)
        b_ref[0, pl.ds(1, ho2), pl.ds(0, wo2), :],   # (2h+2, 2w+1)
        c_ref[0, pl.ds(0, ho2), pl.ds(0, wo2), :],   # (2h+1, 2w)
        c_ref[0, pl.ds(0, ho2), pl.ds(1, wo2), :],   # (2h+1, 2w+2)
        d_ref[0, pl.ds(0, ho2), pl.ds(0, wo2), :],   # (2h+1, 2w+1)
    ]
    o_ref[0] = functools.reduce(jnp.maximum, taps)


# ---------------------------------------------------------------------------
# Conv3d + folded BN + ReLU
# ---------------------------------------------------------------------------
def conv3d_bn_relu(x, w, scale, shift, stride, padding):
    """x: (N, C, T, H, W) NCDHW.  Returns channels-last (N, To, Ho, Wo, Cout) f32."""
    N, C, T, H, W = x.shape
    Cout, Cin, kT, kH, kW = w.shape
    assert Cin == C
    sT, sH, sW = stride
    pT, pH, pW = padding
    To = (T + 2 * pT - kT) // sT + 1
    Ho = (H + 2 * pH - kH) // sH + 1
    Wo = (W + 2 * pW - kW) // sW + 1
    M = N * To * Ho * Wo
    K = Cin * kT * kH * kW

    # Channels-last transpose of the *raw* input only (1x, cheap) -- the
    # expanded patches are then built already in the right order (no big
    # transpose of the kT*kH*kW-expanded tensor).
    x_cl = jnp.transpose(x, (0, 2, 3, 4, 1))
    xp = jnp.pad(x_cl, ((0, 0), (pT, pT), (pH, pH), (pW, pW), (0, 0)))

    taps = []
    for kt in range(kT):
        for kh in range(kH):
            for kw in range(kW):
                taps.append(
                    xp[:,
                       kt:kt + sT * (To - 1) + 1:sT,
                       kh:kh + sH * (Ho - 1) + 1:sH,
                       kw:kw + sW * (Wo - 1) + 1:sW, :])
    # K ordering = (kt, kh, kw, cin); the weight is reordered to match below.
    patches = jnp.concatenate(taps, axis=-1).reshape(M, K)
    w_mat = jnp.transpose(w, (2, 3, 4, 1, 0)).reshape(K, Cout).astype(jnp.float32)

    # Lane-dense output: fold r output rows into the lane axis so the output
    # block's last dim (r*Cout) is a multiple of 128 -> unmasked full-width vst.
    r = 128 // math.gcd(Cout, 128)
    if r > 32:            # odd Cout -> fall back to plain layout
        r = 1
    lane_w = r * Cout

    # Pad K up to a multiple of 128 (clean aligned MXU feeds).
    Kp = _round_up(K, 128)
    patches = jnp.pad(patches, ((0, 0), (0, Kp - K)))
    w_mat = jnp.pad(w_mat, ((0, Kp - K), (0, 0)))

    # Tile sizing: ~2 MiB bf16 patch blocks, M padded to a tile multiple, and
    # at least 2 grid steps when possible (v7x megacore).
    Mg = pl.cdiv(M, r)                          # number of r-row groups
    bytes_per_group = r * Kp * 2                # bf16
    cap = max(8, (2 * 1024 * 1024) // bytes_per_group)
    tile_g = min(cap, max(8, _round_up(pl.cdiv(Mg, 2), 8)))
    tile_g = _round_up(tile_g, 8)
    G = pl.cdiv(Mg, tile_g)
    Mp = G * tile_g * r

    patches = jnp.pad(patches, ((0, Mp - M), (0, 0))).astype(jnp.bfloat16)
    patches2 = patches.reshape(Mp // r, r * Kp)      # free row-major reshape

    # Block-diagonal weight: out[g, j*Cout + c] = conv row g*r + j, channel c.
    w_big = jnp.kron(jnp.eye(r, dtype=jnp.float32), w_mat).astype(jnp.bfloat16)
    scale_t = jnp.tile(scale.astype(jnp.float32), r).reshape(1, lane_w)
    shift_t = jnp.tile(shift.astype(jnp.float32), r).reshape(1, lane_w)

    cost = pl.CostEstimate(
        flops=2 * (Mp // r) * (r * Kp) * lane_w,
        transcendentals=0,
        bytes_accessed=int(patches2.size) * 2 + int(w_big.size) * 2
                       + (Mp // r) * lane_w * 4 + 2 * lane_w * 4)

    out = pl.pallas_call(
        conv_bn_relu_kernel,
        out_shape=jax.ShapeDtypeStruct((Mp // r, lane_w), jnp.float32),
        grid=(G,),
        in_specs=[
            pl.BlockSpec((tile_g, r * Kp), lambda i: (i, 0)),
            pl.BlockSpec((r * Kp, lane_w), lambda i: (0, 0)),
            pl.BlockSpec((1, lane_w), lambda i: (0, 0)),
            pl.BlockSpec((1, lane_w), lambda i: (0, 0)),
        ],
        out_specs=pl.BlockSpec((tile_g, lane_w), lambda i: (i, 0)),
        compiler_params=pltpu.CompilerParams(
            dimension_semantics=("parallel",),
            vmem_limit_bytes=32 * 1024 * 1024),
        cost_estimate=cost,
    )(patches2, w_big, scale_t, shift_t)

    y = out.reshape(Mp, Cout)[:M]                    # drop M padding rows
    return y.reshape(N, To, Ho, Wo, Cout)


# ---------------------------------------------------------------------------
# MaxPool3d(kernel=[1,3,3], stride=[1,2,2], padding=[0,1,1]) on channels-last y
# ---------------------------------------------------------------------------
def maxpool3d_133(y):
    N, T, Ho, Wo, C = y.shape
    Ho2 = (Ho + 2 - 3) // 2 + 1
    Wo2 = (Wo + 2 - 3) // 2 + 1
    NT = N * T

    # Post-ReLU values are >= 0 and every pooling window contains a valid
    # element, so zero padding is equivalent to -inf padding.
    yp = jnp.pad(y.reshape(NT, Ho, Wo, C).astype(jnp.float32),
                 ((0, 0), (1, 1), (1, 1), (0, 0)))

    # H/W parity split in glue (XLA strided slices, ~1x y of traffic) so the
    # kernel needs only contiguous offset loads.
    A = yp[:, 0::2, 0::2, :]     # even H, even W
    B = yp[:, 0::2, 1::2, :]     # even H, odd  W
    Cq = yp[:, 1::2, 0::2, :]    # odd  H, even W
    D = yp[:, 1::2, 1::2, :]     # odd  H, odd  W

    cost = pl.CostEstimate(
        flops=9 * NT * Ho2 * Wo2 * C,
        transcendentals=0,
        bytes_accessed=4 * (int(A.size) + int(B.size) + int(Cq.size)
                            + int(D.size) + NT * Ho2 * Wo2 * C))

    def spec(arr):
        return pl.BlockSpec((1,) + arr.shape[1:], lambda nt: (nt, 0, 0, 0))

    out = pl.pallas_call(
        maxpool_kernel,
        out_shape=jax.ShapeDtypeStruct((NT, Ho2, Wo2, C), jnp.float32),
        grid=(NT,),
        in_specs=[spec(A), spec(B), spec(Cq), spec(D)],
        out_specs=pl.BlockSpec((1, Ho2, Wo2, C), lambda nt: (nt, 0, 0, 0)),
        compiler_params=pltpu.CompilerParams(
            dimension_semantics=("parallel",),
            vmem_limit_bytes=32 * 1024 * 1024),
        cost_estimate=cost,
    )(A, B, Cq, D)

    return out.reshape(N, T, Ho2, Wo2, C)


# ---------------------------------------------------------------------------
# Stem forward (eval-mode BN folded into scale/shift)
# ---------------------------------------------------------------------------
def resnet_basic_stem_forward(x, params, stride, padding, eps=1e-5):
    """One pathway of VideoModelStem (basic_stem): Conv3d -> BN -> ReLU -> MaxPool."""
    w, gamma, beta, run_mean, run_var = params
    scale = gamma / jnp.sqrt(run_var + eps)
    shift = beta - run_mean * scale
    y = conv3d_bn_relu(x, w, scale, shift, stride, padding)   # (N, To, Ho, Wo, Cout)
    y = maxpool3d_133(y)                                      # (N, To, Ho2, Wo2, Cout)
    return jnp.transpose(y, (0, 4, 1, 2, 3))                  # back to NCDHW


def video_model_stem_forward(xs, params_list, strides, paddings, eps=1e-5):
    """VideoModelStem.forward: apply the per-pathway stem to each input tensor."""
    assert len(xs) == len(params_list)
    return [resnet_basic_stem_forward(x, p, tuple(s), tuple(pad), eps)
            for x, p, s, pad in zip(xs, params_list, strides, paddings)]


# ---------------------------------------------------------------------------
# Pure-JAX reference (bf16 conv inputs to match the kernel's bf16/f32-acc path)
# ---------------------------------------------------------------------------
def reference_stem(x, params, stride, padding, eps=1e-5):
    w, gamma, beta, run_mean, run_var = params
    y = lax.conv_general_dilated(
        x.astype(jnp.bfloat16), w.astype(jnp.bfloat16),
        window_strides=tuple(stride), padding=[(p, p) for p in padding],
        dimension_numbers=("NCDHW", "OIDHW", "NCDHW"),
        preferred_element_type=jnp.float32)
    scale = (gamma / jnp.sqrt(run_var + eps))[None, :, None, None, None]
    shift = (beta - run_mean * gamma / jnp.sqrt(run_var + eps))[None, :, None, None, None]
    y = jnp.maximum(y * scale + shift, 0.0)
    y = lax.reduce_window(
        y, -jnp.inf, lax.max,
        window_dimensions=(1, 1, 1, 3, 3), window_strides=(1, 1, 1, 2, 2),
        padding=((0, 0), (0, 0), (0, 0), (1, 1), (1, 1)))
    return y


# ---------------------------------------------------------------------------
if __name__ == "__main__":
    # VideoModelStem config: single pathway, basic_stem.
    dim_in = [3]
    dim_out = [8]
    kernel = [[3, 3, 3]]
    stride = [[1, 2, 2]]
    padding = [[1, 1, 1]]
    eps = 1e-5

    key = jax.random.PRNGKey(0)
    kx, kw, kg, kb, km, kv = jax.random.split(key, 6)

    N, T, H, W = 2, 4, 16, 16
    x = jax.random.normal(kx, (N, dim_in[0], T, H, W), dtype=jnp.float32)

    w = 0.1 * jax.random.normal(kw, (dim_out[0], dim_in[0], *kernel[0]), dtype=jnp.float32)
    gamma = 1.0 + 0.05 * jax.random.normal(kg, (dim_out[0],), dtype=jnp.float32)
    beta = 0.02 * jax.random.normal(kb, (dim_out[0],), dtype=jnp.float32)
    run_mean = 0.01 * jax.random.normal(km, (dim_out[0],), dtype=jnp.float32)
    run_var = 0.5 + 0.1 * jnp.abs(jax.random.normal(kv, (dim_out[0],), dtype=jnp.float32))
    params = (w, gamma, beta, run_mean, run_var)

    outs = video_model_stem_forward([x], [params], stride, padding, eps)
    out = jax.block_until_ready(outs[0])

    ref = jax.block_until_ready(reference_stem(x, params, tuple(stride[0]), padding[0], eps))

    assert out.shape == ref.shape, (out.shape, ref.shape)
    err = float(jnp.max(jnp.abs(out - ref)))
    assert jnp.allclose(out, ref, rtol=1e-2, atol=1e-2), err

    print("KERNEL_OK")
</pallas_src>

<mosaic_0001>
module attributes {stable_mosaic.version = 11 : i64} {
  func.func @conv_bn_relu_kernel(%arg0: i32, %arg1: memref<16x2048xbf16, #tpu.memory_space<vmem>>, %arg2: memref<2048x128xbf16, #tpu.memory_space<vmem>>, %arg3: memref<1x128xf32, #tpu.memory_space<vmem>>, %arg4: memref<1x128xf32, #tpu.memory_space<vmem>>, %arg5: memref<16x128xf32, #tpu.memory_space<vmem>>) attributes {dimension_semantics = [#tpu.dimension_semantics<parallel>], iteration_bounds = array<i64: 2>, scalar_prefetch = 0 : i64, scratch_operands = 0 : i64, tpu.core_type = #tpu.core_type<tc>, window_params = [{transform_indices = @transform_0, window_bounds = array<i64: 16, 2048>}, {pipeline_mode = #tpu.pipeline_mode<synchronous>, transform_indices = @transform_1, window_bounds = array<i64: 2048, 128>}, {pipeline_mode = #tpu.pipeline_mode<synchronous>, transform_indices = @transform_2, window_bounds = array<i64: 1, 128>}, {pipeline_mode = #tpu.pipeline_mode<synchronous>, transform_indices = @transform_3, window_bounds = array<i64: 1, 128>}, {transform_indices = @transform_4, window_bounds = array<i64: 16, 128>}]} {
    %c0 = arith.constant 0 : index
    %c0_0 = arith.constant 0 : index
    %0 = vector.load %arg1[%c0, %c0_0] : memref<16x2048xbf16, #tpu.memory_space<vmem>>, vector<16x2048xbf16>
    %c0_1 = arith.constant 0 : index
    %c0_2 = arith.constant 0 : index
    %1 = vector.load %arg2[%c0_1, %c0_2] : memref<2048x128xbf16, #tpu.memory_space<vmem>>, vector<2048x128xbf16>
    %cst = arith.constant dense<0.000000e+00> : vector<16x128xf32>
    %2 = tpu.matmul %0, %1, %cst {dimension_numbers = #tpu.dot_dimension_numbers<[1], [0], [0], [1], [0, 0, 1, 1], [], []>} : vector<16x2048xbf16>, vector<2048x128xbf16>, vector<16x128xf32> -> vector<16x128xf32>
    %c0_3 = arith.constant 0 : index
    %c0_4 = arith.constant 0 : index
    %3 = vector.load %arg3[%c0_3, %c0_4] : memref<1x128xf32, #tpu.memory_space<vmem>>, vector<1x128xf32>
    %4 = vector.broadcast %3 : vector<1x128xf32> to vector<16x128xf32>
    %5 = arith.mulf %2, %4 : vector<16x128xf32>
    %c0_5 = arith.constant 0 : index
    %c0_6 = arith.constant 0 : index
    %6 = vector.load %arg4[%c0_5, %c0_6] : memref<1x128xf32, #tpu.memory_space<vmem>>, vector<1x128xf32>
    %7 = vector.broadcast %6 : vector<1x128xf32> to vector<16x128xf32>
    %8 = arith.addf %5, %7 : vector<16x128xf32>
    %cst_7 = arith.constant 0.000000e+00 : f32
    %9 = vector.broadcast %cst_7 : f32 to vector<16x128xf32>
    %10 = arith.maximumf %8, %9 : vector<16x128xf32>
    %c0_8 = arith.constant 0 : index
    %c0_9 = arith.constant 0 : index
    %11 = vector.load %arg5[%c0_8, %c0_9] : memref<16x128xf32, #tpu.memory_space<vmem>>, vector<16x128xf32>
    tpu.vector_store %arg5[%c0_8, %c0_9], %10 {strides = array<i32>} : memref<16x128xf32, #tpu.memory_space<vmem>>, vector<16x128xf32>,
    return
  }
  func.func @transform_0(%arg0: i32) -> (i32, i32) {
    %c0_i32 = arith.constant 0 : i32
    %c0_i32_0 = arith.constant 0 : i32
    return %arg0, %c0_i32 : i32, i32
  }
  func.func @transform_1(%arg0: i32) -> (i32, i32) {
    %c0_i32 = arith.constant 0 : i32
    %c0_i32_0 = arith.constant 0 : i32
    %c0_i32_1 = arith.constant 0 : i32
    return %c0_i32, %c0_i32_0 : i32, i32
  }
  func.func @transform_2(%arg0: i32) -> (i32, i32) {
    %c0_i32 = arith.constant 0 : i32
    %c0_i32_0 = arith.constant 0 : i32
    %c0_i32_1 = arith.constant 0 : i32
    return %c0_i32, %c0_i32_0 : i32, i32
  }
  func.func @transform_3(%arg0: i32) -> (i32, i32) {
    %c0_i32 = arith.constant 0 : i32
    %c0_i32_0 = arith.constant 0 : i32
    %c0_i32_1 = arith.constant 0 : i32
    return %c0_i32, %c0_i32_0 : i32, i32
  }
  func.func @transform_4(%arg0: i32) -> (i32, i32) {
    %c0_i32 = arith.constant 0 : i32
    %c0_i32_0 = arith.constant 0 : i32
    return %arg0, %c0_i32 : i32, i32
  }
}

</mosaic_0001>

<bundles_post_ra>
// kernel: tpu_custom_call.1
= control target key start
LH: loop header
LB: loop body
LE: loop exit
PB: predicated region body
PF: predicated region fallthrough
CT: control target
= control target key end

     0   :  { %9 = vsyncpa [#allocation3], 0  ;;  %s2696_s0 = inlined_call_operand.hbm [shape: bf16[32,2048], index: 0, kind: input, shape index: {}]   ;;  %s2697_s1 = inlined_call_operand.hbm [shape: bf16[2048,128], index: 1, kind: input, shape index: {}]   ;;  %s2698_s2 = inlined_call_operand.vmem [shape: f32[1,128], index: 2, kind: input, shape index: {}]   ;;  %s2699_s3 = inlined_call_operand.vmem [shape: f32[1,128], index: 3, kind: input, shape index: {}]   ;;  %s2700_s4 = inlined_call_operand.hbm [shape: f32[32,128], index: 4, kind: output, shape index: {}]  }
   0x1   :  { %11 = vsyncpa [#allocation3 + $0x1], 0 }
   0x2   :  { %12 = vsyncpa [#allocation6], 0 }
   0x3   :  { %13 = vsyncpa [#allocation4], 0 }
   0x4   :  { %15 = vsyncpa [#allocation4 + $0x1], 0  ;;  %s2491_s15 = smov 0   ;;  %s2493_s16 = smov 0  }
   0x5   :  { %s2495_s17 = smov 0   ;;  %s2497_s18 = smov 0  }
   0x6 LB: > { %s2512_s19 = sadd.s32 4294967295, %s2456_s18   ;;  %s1802_s20 = sadd.s32 4294967294, %s2456_s18   ;;  %s2456_s18 = sphi %s2497_s18, %s2722_s18   ;;  %s2452_s17 = sphi %s2495_s17, %s2721_s17   ;;  %s2448_s16 = sphi %s2493_s16, %s2720_s16   ;;  %s2444_s15 = sphi %s2491_s15, %s2719_s15  }
   0x7   : > { %p41_p0 = scmp.ne.s32.totalorder %s2448_s16, %s2444_s15  ;;  %p2701_p1 = scmp.eq.s32.totalorder %s2512_s19, 0 }
   0x8   : > { %p134_p3 = scmp.eq.s32.totalorder %s1802_s20, 1  ;;  %p1803_p5 = scmp.ge.s32.totalorder %s2456_s18, 1 }
   0x9   : > { %p2521_p4 = por %p2701_p1, %p41_p0  ;;  %p141_p7 = scmp.lt.s32.totalorder %s2456_s18, 3 }
   0xa   : > { %p2526_p6 = por %p134_p3, %p41_p0  ;;  %s2458_s24 = smov [#allocation5]  }
   0xb   : > { %s2705_s21 = scalar_select %p2521_p4, 1, 0 }
   0xc   : > { %s2706_s22 = scalar_select %p2526_p6, 1, 0 }
   0xd   : > { %p2531_p8 = pnand %p1803_p5, %p141_p7  ;;  %s153_s25 = sshll.u32 %s2458_s24, 4  ;;  %s154_s25 = int_to_ptr.vmem [resolvable:$true] %s153_s25 }
   0xe   : > { %s2545_s27 = sadd.s32 1, %s2456_s18   ;;  %s28_s28 = sadd.s32 1, %s2452_s17 }
   0xf   : > { %s2707_s23 = scalar_select %p2531_p8, 1, 0 }
  0x10   : > { %p2152_p9 = pneg %p2531_p8  ;;  %s25_s29 = ssub.s32 %s2456_s18, %s2545_s27 }
  0x11   : > { %s2345_s30 = scalar_lea.vmem %s154_s25, 16384  ;;  %p2353_p5 = scmp.lt.s32.totalorder %s154_s25, %s154_s25 }
  0x12   : > { %p2540_p11 = pnand %p2152_p9, %p2701_p1  ;;  %p2346_p13 = scmp.ne.s32.totalorder %s154_s25, %s2345_s30 }
  0x13   : > { %p2354_p7 = scmp.lt.s32.totalorder %s2345_s30, %s2345_s30 }
  0x14   : > { %p2336_p12 = pneg %p2540_p11 }
  0x15   : > { %p2355_p10 = por %p2354_p7, %p2353_p5 }
  0x16   : > { %p2348_p0 = pnand %p2346_p13, %p2336_p12 }
  0x18   : > { %p2349_p3 = pneg %p2348_p0 }
  0x1a   : > { %p2356_p2 = pnand %p2355_p10, %p2349_p3 }
  0x1c   : > { %2359 = shalt.err (!%p2356_p2)
}
  0x1d   : > { %s2459_s5 = smov 64   ;;  %s2460_s6 = smov 4  }
  0x1e   : > { %2155 = dma.hbm_to_vmem [thread:$0]  (!%p2540_p11), %s2697_s1, 16384, %s154_s25, [#allocation6], %s2459_s5, %s2459_s5, %s2460_s6  }
  0x1f   : > { %p26_p9 = scmp.eq.s32.totalorder %s25_s29, 0  ;;  %p35_p2 = scmp.ne.s32.totalorder %s2452_s17, %s2448_s16 }
  0x20   : > { %p36_p10 = scmp.eq.s32.totalorder %s2456_s18, 0  ;;  %p2165_p12 = scmp.lt.s32.totalorder %s2456_s18, 2 }
  0x21   : > { %s2564_s9 = scalar_select %p26_p9, %s2452_s17, %s28_s28  }
  0x22   : > { %p37_p13 = por %p36_p10, %p35_p2  ;;  %p2709_p0 = scmp.eq.s32.totalorder %s2512_s19, 1 }
  0x23   : > { %s173_s11 = sand.u32 1, %s2452_s17   ;;  %s1966_s12 = sshll.u32 %s2456_s18, 11 }
  0x24   : > { %p2568_p3 = por %p2709_p0, %p35_p2  ;;  %s1806_s13 = sshll.u32 %s173_s11, 7 }
  0x25   : > { %s2577_s24 = scalar_lea.hbm %s2696_s0, %s1966_s12  ;;  %s177_s25 = scalar_lea.vmem [#allocation2], %s1806_s13 }
  0x26   : > { %s2710_s10 = scalar_select %p2568_p3, 1, 0 }
  0x27   : > { %s185_s26 = sshll.u32 %s177_s25, 4  ;;  %p2579_p11 = pnand %p2165_p12, %p37_p13  ;;  %s2583_s26 = int_to_ptr.vmem [resolvable:$true] %s185_s26 }
  0x28   : > { %s2585_s29 = scalar_lea.sflag [#allocation3], %s173_s11  ;;  %s2360_s30 = scalar_lea.hbm %s2577_s24, 2048 }
  0x29   : > { %p2361_p5 = scmp.ne.s32.totalorder %s2577_s24, %s2360_s30  ;;  %p2362_p7 = pneg %p2579_p11 }
  0x2a   : > { %s2365_s8 = scalar_lea.hbm %s2696_s0, 4096  ;;  %p2366_p10 = scmp.lt.s32.totalorder %s2577_s24, %s2696_s0 }
  0x2b   : > { %p2363_p9 = pnand %p2362_p7, %p2361_p5  ;;  %p2367_p12 = scmp.lt.s32.totalorder %s2365_s8, %s2360_s30 }
  0x2d   : > { %p2364_p2 = pneg %p2363_p9  ;;  %p2368_p13 = por %p2367_p12, %p2366_p10 }
  0x2f   : > { %p2369_p0 = pnand %p2368_p13, %p2364_p2 }
  0x31   : > { %2372 = shalt.err (!%p2369_p0)
}
  0x32   : > { %s2373_s11 = scalar_lea.vmem %s2583_s26, 2048  ;;  %s2461_s14 = smov [#allocation2]  }
  0x33   : > { %p2374_p1 = scmp.ne.s32.totalorder %s2583_s26, %s2373_s11  ;;  %s2378_s20 = sshll.u32 %s2461_s14, 4  ;;  %s2379_s20 = int_to_ptr.vmem [resolvable:$false] %s2378_s20 }
  0x34   : > { %s2380_s25 = scalar_lea.vmem %s2379_s20, 4096  ;;  %p2381_p9 = scmp.lt.s32.totalorder %s2583_s26, %s2379_s20 }
  0x35   : > { %p2376_p6 = pnand %p2374_p1, %p2362_p7  ;;  %p2382_p3 = scmp.lt.s32.totalorder %s2380_s25, %s2373_s11 }
  0x37   : > { %p2377_p5 = pneg %p2376_p6  ;;  %p2383_p4 = por %p2382_p3, %p2381_p9 }
  0x39   : > { %p2384_p8 = pnand %p2383_p4, %p2377_p5 }
  0x3b   : > { %2387 = shalt.err (!%p2384_p8)
}
  0x3c   : > { %s2462_s30 = smov 1024   ;;  %p2712_p1 = scmp.ne.s32.totalorder %s2707_s23, 0 }
  0x3d   : > { %2159 = dma.hbm_to_vmem [thread:$0]  (!%p2579_p11), %s2577_s24, 2048, %s2583_s26, %s2585_s29, %s2462_s30, %s2462_s30, %s2459_s5  }
  0x3e   : > { %197 = sbr.rel (%p2712_p1) target bundleno = 426 (0x1aa), region = 36  ;;  %s2610_s6 = sand.u32 (!%p2712_p1), 1, %s2448_s16  }
  0x3f   : > { %s1811_s7 = sshll.u32 (!%p2712_p1), %s2610_s6, 7  ;;  %s200_s8 = scalar_lea.sflag (!%p2712_p1), [#allocation3], %s2610_s6 }
  0x40   : > { %s2614_s12 = scalar_lea.vmem (!%p2712_p1), [#allocation2], %s1811_s7  ;;  %p2713_p4 = scmp.ne.s32.totalorder (!%p2712_p1), %s2705_s21, 0 }
  0x43   : > { %2431 = dma.done.wait (%p2713_p4), %s200_s8, 2048  }
  0x44   : > { %2433 = vsyncadd (%p2713_p4), %s200_s8, 4294965248  ;;  %p2714_p6 = scmp.eq.s32.totalorder %s2512_s19, 0 }
  0x46   : > { %2435 = dma.done.wait (%p2714_p6), [#allocation6], 16384   ;;  %p2715_p8 = pmov %p2714_p6 }
  0x47   : > { %v2206_v0 = vld [vmem:[#allocation5 + $0x78] sm:$0xff]   ;;  %v2210_v4 = vld [vmem:[#allocation5 + $0x70] sm:$0xff]   ;;  %v2214_v8 = vld [vmem:[#allocation5 + $0x68] sm:$0xff]   ;;  %s1813_s26 = sshll.u32 %s2610_s6, 4  ;;  %s1967_s28 = sshll.u32 %s2512_s19, 8 }
  0x48   : > { %2437 = vsyncadd (%p2715_p8), [#allocation6], 4294950912  ;;  %v2207_v1 = vld [vmem:[#allocation5 + $0xf8] sm:$0xff]   ;;  %1968 = vmatprep.subr.bf16.mxu0 %v2206_v0  ;;  %v2211_v5 = vld [vmem:[#allocation5 + $0xf0] sm:$0xff]   ;;  %s231_s29 = scalar_lea.vmem [#allocation7], %s1813_s26  ;;  %s2651_s20 = scalar_lea.hbm %s2700_s4, %s1967_s28 }
  0x49   : > { %v2208_v2 = vld [vmem:[#allocation5 + $0x38] sm:$0xff]   ;;  %1990 = vmatprep.subr.bf16.mxu1 %v2207_v1  ;;  %v2212_v6 = vld [vmem:[#allocation5 + $0x30] sm:$0xff]   ;;  %v2215_v9 = vld [vmem:[#allocation5 + $0xe8] sm:$0xff]   ;;  %s1719_s13 = sshll.u32 %s231_s29, 4  ;;  %s1706_s25 = scalar_lea.sflag [#allocation4], %s2610_s6  ;;  %s2653_s13 = int_to_ptr.vmem [resolvable:$true] %s1719_s13 }
  0x4a   : > { %v2209_v3 = vld [vmem:[#allocation5 + $0xb8] sm:$0xff]   ;;  %1969 = vmatpush3.bf16.msra.mxu0 %v2208_v2  ;;  %v2213_v7 = vld [vmem:[#allocation5 + $0xb0] sm:$0xff]   ;;  %v2216_v10 = vld [vmem:[#allocation5 + $0x28] sm:$0xff]   ;;  %s2388_s30 = scalar_lea.vmem %s2653_s13, 256  ;;  %p2716_p11 = scmp.ne.s32.totalorder %s2710_s10, 0 }
  0x4b   : > { %1991 = vmatpush3.bf16.msra.mxu1 %v2209_v3  ;;  %1970 = vmatprep.subr.bf16.mxu0 %v2210_v4  ;;  %v2217_v11 = vld [vmem:[#allocation5 + $0xa8] sm:$0xff]   ;;  %v2218_v12 = vld [vmem:[#allocation5 + $0x60] sm:$0xff]   ;;  %v2222_v16 = vld [vmem:[#allocation5 + $0x58] sm:$0xff]   ;;  %p2389_p3 = scmp.ne.s32.totalorder %s2653_s13, %s2388_s30  ;;  %s2463_s19 = smov [#allocation7]  }
  0x4c   : > { %1992 = vmatprep.subr.bf16.mxu1 %v2211_v5  ;;  %v2219_v13 = vld [vmem:[#allocation5 + $0xe0] sm:$0xff]   ;;  %v2223_v17 = vld [vmem:[#allocation5 + $0xd8] sm:$0xff]   ;;  %v2226_v20 = vld [vmem:[#allocation5 + $0x50] sm:$0xff]   ;;  %s2392_s7 = sshll.u32 %s2463_s19, 4  ;;  %s2393_s7 = int_to_ptr.vmem [resolvable:$false] %s2392_s7 }
  0x4d   : > { %v2220_v14 = vld [vmem:[#allocation5 + $0x20] sm:$0xff]   ;;  %v2224_v18 = vld [vmem:[#allocation5 + $0x18] sm:$0xff]   ;;  %v2227_v21 = vld [vmem:[#allocation5 + $0xd0] sm:$0xff]   ;;  %p2390_p7 = pnand %p2389_p3, %p2716_p11  ;;  %s2394_s8 = scalar_lea.vmem %s2393_s7, 512 }
  0x4e   : > { %1971 = vmatpush3.bf16.msra.mxu0 %v2212_v6  ;;  %v2221_v15 = vld [vmem:[#allocation5 + $0xa0] sm:$0xff]   ;;  %v2225_v19 = vld [vmem:[#allocation5 + $0x98] sm:$0xff]   ;;  %v2228_v22 = vld [vmem:[#allocation5 + $0x10] sm:$0xff]   ;;  %p2395_p10 = scmp.lt.s32.totalorder %s2653_s13, %s2393_s7  ;;  %p2396_p12 = scmp.lt.s32.totalorder %s2394_s8, %s2388_s30 }
  0x4f   : > { %1993 = vmatpush3.bf16.msra.mxu1 %v2213_v7  ;;  %1972 = vmatprep.subr.bf16.mxu0 %v2214_v8  ;;  %v2229_v23 = vld [vmem:[#allocation5 + $0x90] sm:$0xff]   ;;  %v2230_v24 = vld [vmem:[#allocation5 + $0x48] sm:$0xff]   ;;  %v2234_v28 = vld [vmem:[#allocation5 + $0x40] sm:$0xff]   ;;  %p2391_p2 = pneg %p2390_p7 }
  0x50   : > { %1994 = vmatprep.subr.bf16.mxu1 %v2215_v9  ;;  %v2231_v25 = vld [vmem:[#allocation5 + $0xc8] sm:$0xff]   ;;  %v2235_v29 = vld [vmem:[#allocation5 + $0xc0] sm:$0xff]   ;;  %v2238_v40 = vld [vmem:[#allocation5 + $0x178] sm:$0xff]   ;;  %p2397_p13 = por %p2396_p12, %p2395_p10 }
  0x51   : > { %v2232_v26 = vld [vmem:[#allocation5 + $0x8] sm:$0xff]   ;;  %v2236_v30 = vld [vmem:[#allocation5] sm:$0xff]   ;;  %v2239_v41 = vld [vmem:[#allocation5 + $0x1f8] sm:$0xff]  }
  0x52   : > { %1973 = vmatpush3.bf16.msra.mxu0 %v2216_v10  ;;  %v2233_v27 = vld [vmem:[#allocation5 + $0x88] sm:$0xff]   ;;  %v2237_v31 = vld [vmem:[#allocation5 + $0x80] sm:$0xff]   ;;  %v2240_v42 = vld [vmem:[#allocation5 + $0x138] sm:$0xff]   ;;  %p2398_p0 = pnand %p2397_p13, %p2391_p2 }
  0x53   : > { %1995 = vmatpush3.bf16.msra.mxu1 %v2217_v11  ;;  %1974 = vmatprep.subr.bf16.mxu0 %v2218_v12  ;;  %v235_v32 = vld [vmem:[%s2614_s12] sm:$0xff]  ;;  %v236_v34 = vld [vmem:[%s2614_s12 + $0x8] sm:$0xff]  ;;  %v2241_v43 = vld [vmem:[#allocation5 + $0x1b8] sm:$0xff]  }
  0x54   : > { %1996 = vmatprep.subr.bf16.mxu1 %v2219_v13  ;;  %v243_v33 = vld [vmem:[%s2614_s12 + $0x40] sm:$0xff]  ;;  %v244_v37 = vld [vmem:[%s2614_s12 + $0x48] sm:$0xff]  ;;  %v2242_v44 = vld [vmem:[#allocation5 + $0x170] sm:$0xff]  }
  0x55   : > { %v1814_v35 = vcombine.low %v235_v32, %v243_v33  ;;  %v1815_v36 = vcombine.high %v235_v32, %v243_v33  ;;  %v1816_v38 = vcombine.low %v236_v34, %v244_v37  ;;  %v1817_v39 = vcombine.high %v236_v34, %v244_v37  ;;  %v2243_v45 = vld [vmem:[#allocation5 + $0x1f0] sm:$0xff]   ;;  %v2246_v48 = vld [vmem:[#allocation5 + $0x168] sm:$0xff]   ;;  %v2250_v52 = vld [vmem:[#allocation5 + $0x160] sm:$0xff]  }
  0x56   : > { %1975 = vmatpush3.bf16.msra.mxu0 %v2220_v14  ;;  %v2244_v46 = vld [vmem:[#allocation5 + $0x130] sm:$0xff]   ;;  %v2247_v49 = vld [vmem:[#allocation5 + $0x1e8] sm:$0xff]   ;;  %v2251_v53 = vld [vmem:[#allocation5 + $0x1e0] sm:$0xff]  }
  0x57   : > { %1997 = vmatpush3.bf16.msra.mxu1 %v2221_v15  ;;  %1976 = vmatprep.subr.bf16.mxu0 %v2222_v16  ;;  %v2245_v47 = vld [vmem:[#allocation5 + $0x1b0] sm:$0xff]   ;;  %v2248_v50 = vld [vmem:[#allocation5 + $0x128] sm:$0xff]   ;;  %v2252_v54 = vld [vmem:[#allocation5 + $0x120] sm:$0xff]  }
  0x58   : > { %1998 = vmatprep.subr.bf16.mxu1 %v2223_v17  ;;  %1387 = vmatprep.mubr.bf16.mxu0 %v1815_v36  ;;  %v2249_v51 = vld [vmem:[#allocation5 + $0x1a8] sm:$0xff]   ;;  %v2253_v55 = vld [vmem:[#allocation5 + $0x1a0] sm:$0xff]   ;;  %v2254_v56 = vld [vmem:[#allocation5 + $0x158] sm:$0xff]  }
  0x59   : > { %1428 = vmatprep.mubr.bf16.mxu1 %v1817_v39  ;;  %v2255_v57 = vld [vmem:[#allocation5 + $0x1d8] sm:$0xff]   ;;  %v2258_v60 = vld [vmem:[#allocation5 + $0x150] sm:$0xff]   ;;  %v2262_v0 = vld [vmem:[#allocation5 + $0x148] sm:$0xff]  }
  0x5a   : > { %1977 = vmatpush3.bf16.msra.mxu0 %v2224_v18  ;;  %v2256_v58 = vld [vmem:[#allocation5 + $0x118] sm:$0xff]   ;;  %v2259_v61 = vld [vmem:[#allocation5 + $0x1d0] sm:$0xff]   ;;  %v2263_v1 = vld [vmem:[#allocation5 + $0x1c8] sm:$0xff]  }
  0x5b   : > { %1999 = vmatpush3.bf16.msra.mxu1 %v2225_v19  ;;  %1978 = vmatprep.subr.bf16.mxu0 %v2226_v20  ;;  %v2257_v59 = vld [vmem:[#allocation5 + $0x198] sm:$0xff]   ;;  %v2260_v62 = vld [vmem:[#allocation5 + $0x110] sm:$0xff]   ;;  %v2264_v2 = vld [vmem:[#allocation5 + $0x108] sm:$0xff]  }
  0x5c   : > { %2000 = vmatprep.subr.bf16.mxu1 %v2227_v21  ;;  %v2261_v63 = vld [vmem:[#allocation5 + $0x190] sm:$0xff]   ;;  %v2265_v3 = vld [vmem:[#allocation5 + $0x188] sm:$0xff]   ;;  %v2266_v4 = vld [vmem:[#allocation5 + $0x140] sm:$0xff]  }
  0x5d   : > { %v2267_v5 = vld [vmem:[#allocation5 + $0x1c0] sm:$0xff]   ;;  %v237_v8 = vld [vmem:[%s2614_s12 + $0x10] sm:$0xff]  ;;  %v238_v12 = vld [vmem:[%s2614_s12 + $0x18] sm:$0xff] }
  0x5e   : > { %1979 = vmatpush3.bf16.msra.mxu0 %v2228_v22  ;;  %v2268_v6 = vld [vmem:[#allocation5 + $0x100] sm:$0xff]   ;;  %v245_v9 = vld [vmem:[%s2614_s12 + $0x50] sm:$0xff]  ;;  %v246_v13 = vld [vmem:[%s2614_s12 + $0x58] sm:$0xff] }
  0x5f   : > { %2001 = vmatpush3.bf16.msra.mxu1 %v2229_v23  ;;  %1980 = vmatprep.subr.bf16.mxu0 %v2230_v24  ;;  %v2269_v7 = vld [vmem:[#allocation5 + $0x180] sm:$0xff]   ;;  %v1818_v10 = vcombine.low %v237_v8, %v245_v9  ;;  %v1819_v11 = vcombine.high %v237_v8, %v245_v9  ;;  %v1820_v14 = vcombine.low %v238_v12, %v246_v13  ;;  %v2270_v16 = vld [vmem:[#allocation5 + $0x278] sm:$0xff]   ;;  %v2274_v20 = vld [vmem:[#allocation5 + $0x270] sm:$0xff]  }
  0x60   : > { %2002 = vmatprep.subr.bf16.mxu1 %v2231_v25  ;;  %v1821_v15 = vcombine.high %v238_v12, %v246_v13  ;;  %v2271_v17 = vld [vmem:[#allocation5 + $0x2f8] sm:$0xff]   ;;  %v2275_v21 = vld [vmem:[#allocation5 + $0x2f0] sm:$0xff]   ;;  %v2278_v24 = vld [vmem:[#allocation5 + $0x268] sm:$0xff]  }
  0x61   : > { %v2272_v18 = vld [vmem:[#allocation5 + $0x238] sm:$0xff]   ;;  %v2276_v22 = vld [vmem:[#allocation5 + $0x230] sm:$0xff]   ;;  %v2279_v25 = vld [vmem:[#allocation5 + $0x2e8] sm:$0xff]  }
  0x62   : > { %1981 = vmatpush3.bf16.msra.mxu0 %v2232_v26  ;;  %v2273_v19 = vld [vmem:[#allocation5 + $0x2b8] sm:$0xff]   ;;  %v2277_v23 = vld [vmem:[#allocation5 + $0x2b0] sm:$0xff]   ;;  %v2280_v26 = vld [vmem:[#allocation5 + $0x228] sm:$0xff]  }
  0x63   : > { %2003 = vmatpush3.bf16.msra.mxu1 %v2233_v27  ;;  %1982 = vmatprep.subr.bf16.mxu0 %v2234_v28  ;;  %v2281_v27 = vld [vmem:[#allocation5 + $0x2a8] sm:$0xff]   ;;  %v2282_v28 = vld [vmem:[#allocation5 + $0x260] sm:$0xff]   ;;  %v2286_v32 = vld [vmem:[#allocation5 + $0x258] sm:$0xff]  }
  0x64   : > { %2004 = vmatprep.subr.bf16.mxu1 %v2235_v29  ;;  %v2283_v29 = vld [vmem:[#allocation5 + $0x2e0] sm:$0xff]   ;;  %v2287_v33 = vld [vmem:[#allocation5 + $0x2d8] sm:$0xff]   ;;  %v2290_v36 = vld [vmem:[#allocation5 + $0x250] sm:$0xff]  }
  0x65   : > { %v2288_v34 = vld [vmem:[#allocation5 + $0x218] sm:$0xff]   ;;  %v2291_v37 = vld [vmem:[#allocation5 + $0x2d0] sm:$0xff]  }
  0x66   : > { %1983 = vmatpush3.bf16.msra.mxu0 %v2236_v30  ;;  %v2284_v30 = vld [vmem:[#allocation5 + $0x220] sm:$0xff]   ;;  %v2293_v39 = vld [vmem:[#allocation5 + $0x290] sm:$0xff]   ;;  %v2318_v8 = vld [vmem:[#allocation5 + $0x358] sm:$0xff]  }
  0x67   : > { %2005 = vmatpush3.bf16.msra.mxu1 %v2237_v31  ;;  %2012 = vmatprep.subr.bf16.mxu0 %v2238_v40  ;;  %v2285_v31 = vld [vmem:[#allocation5 + $0x2a0] sm:$0xff]   ;;  %v2294_v40 = vld [vmem:[#allocation5 + $0x248] sm:$0xff]   ;;  %v2319_v9 = vld [vmem:[#allocation5 + $0x3d8] sm:$0xff]  }
  0x68   : > { %2034 = vmatprep.subr.bf16.mxu1 %v2239_v41  ;;  %v2295_v41 = vld [vmem:[#allocation5 + $0x2c8] sm:$0xff]   ;;  %v2322_v12 = vld [vmem:[#allocation5 + $0x350] sm:$0xff]  }
  0x69   : > { %1388 = vmatmul.mubr.bf16.vlgmr.msra.gmra.mxu0 %v1814_v35  ;;  %v2289_v35 = vld [vmem:[#allocation5 + $0x298] sm:$0xff]   ;;  %v2323_v13 = vld [vmem:[#allocation5 + $0x3d0] sm:$0xff]  }
  0x6a   : > { %1429 = vmatmul.mubr.bf16.vlgmr.msra.gmra.mxu1 %v1816_v38  ;;  %2013 = vmatpush3.bf16.msra.mxu0 %v2240_v42  ;;  %v2292_v38 = vld [vmem:[#allocation5 + $0x210] sm:$0xff]   ;;  %v2296_v42 = vld [vmem:[#allocation5 + $0x208] sm:$0xff]  }
  0x6b   : > { %2035 = vmatpush3.bf16.msra.mxu1 %v2241_v43  ;;  %2014 = vmatprep.subr.bf16.mxu0 %v2242_v44  ;;  %v2297_v43 = vld [vmem:[#allocation5 + $0x288] sm:$0xff]   ;;  %v2298_v44 = vld [vmem:[#allocation5 + $0x240] sm:$0xff]  }
  0x6c   : > { %2036 = vmatprep.subr.bf16.mxu1 %v2243_v45  ;;  %1469 = vmatprep.mubr.bf16.mxu0 %v1819_v11  ;;  %v2299_v45 = vld [vmem:[#allocation5 + $0x2c0] sm:$0xff]   ;;  %v2321_v11 = vld [vmem:[#allocation5 + $0x398] sm:$0xff]  }
  0x6d   : > { %1510 = vmatprep.mubr.bf16.mxu1 %v1821_v15  ;;  %v2325_v15 = vld [vmem:[#allocation5 + $0x390] sm:$0xff]  }
  0x6e   : > { %2015 = vmatpush3.bf16.msra.mxu0 %v2244_v46  ;;  %v2300_v46 = vld [vmem:[#allocation5 + $0x200] sm:$0xff]  }
  0x6f   : > { %2037 = vmatpush3.bf16.msra.mxu1 %v2245_v47  ;;  %2016 = vmatprep.subr.bf16.mxu0 %v2246_v48  ;;  %v2301_v47 = vld [vmem:[#allocation5 + $0x280] sm:$0xff]  }
  0x70   : > { %2038 = vmatprep.subr.bf16.mxu1 %v2247_v49  ;;  %v239_v48 = vld [vmem:[%s2614_s12 + $0x20] sm:$0xff] }
  0x71   : > { %v247_v49 = vld [vmem:[%s2614_s12 + $0x60] sm:$0xff] }
  0x72   : > { %2017 = vmatpush3.bf16.msra.mxu0 %v2248_v50  ;;  %v240_v50 = vld [vmem:[%s2614_s12 + $0x28] sm:$0xff] }
  0x73   : > { %2039 = vmatpush3.bf16.msra.mxu1 %v2249_v51  ;;  %2018 = vmatprep.subr.bf16.mxu0 %v2250_v52  ;;  %v248_v51 = vld [vmem:[%s2614_s12 + $0x68] sm:$0xff]  ;;  %v1822_v52 = vcombine.low %v239_v48, %v247_v49 }
  0x74   : > { %2040 = vmatprep.subr.bf16.mxu1 %v2251_v53  ;;  %v1823_v53 = vcombine.high %v239_v48, %v247_v49 }
  0x76   : > { %2019 = vmatpush3.bf16.msra.mxu0 %v2252_v54  ;;  %v1824_v54 = vcombine.low %v240_v50, %v248_v51 }
  0x77   : > { %2041 = vmatpush3.bf16.msra.mxu1 %v2253_v55  ;;  %2020 = vmatprep.subr.bf16.mxu0 %v2254_v56  ;;  %v1825_v55 = vcombine.high %v240_v50, %v248_v51  ;;  %v2302_v56 = vld [vmem:[#allocation5 + $0x378] sm:$0xff]  }
  0x78   : > { %2042 = vmatprep.subr.bf16.mxu1 %v2255_v57  ;;  %v2303_v57 = vld [vmem:[#allocation5 + $0x3f8] sm:$0xff]  }
  0x7a   : > { %2021 = vmatpush3.bf16.msra.mxu0 %v2256_v58  ;;  %v2304_v58 = vld [vmem:[#allocation5 + $0x338] sm:$0xff]  }
  0x7b   : > { %2043 = vmatpush3.bf16.msra.mxu1 %v2257_v59  ;;  %2022 = vmatprep.subr.bf16.mxu0 %v2258_v60  ;;  %v2305_v59 = vld [vmem:[#allocation5 + $0x3b8] sm:$0xff]   ;;  %v2306_v60 = vld [vmem:[#allocation5 + $0x370] sm:$0xff]  }
  0x7c   : > { %2044 = vmatprep.subr.bf16.mxu1 %v2259_v61  ;;  %v2307_v61 = vld [vmem:[#allocation5 + $0x3f0] sm:$0xff]  }
  0x7e   : > { %2023 = vmatpush3.bf16.msra.mxu0 %v2260_v62  ;;  %v2308_v62 = vld [vmem:[#allocation5 + $0x330] sm:$0xff]  }
  0x7f   : > { %2045 = vmatpush3.bf16.msra.mxu1 %v2261_v63  ;;  %2024 = vmatprep.subr.bf16.mxu0 %v2262_v0  ;;  %v2309_v63 = vld [vmem:[#allocation5 + $0x3b0] sm:$0xff]   ;;  %v2310_v0 = vld [vmem:[#allocation5 + $0x368] sm:$0xff]  }
  0x80   : > { %2046 = vmatprep.subr.bf16.mxu1 %v2263_v1  ;;  %v2311_v1 = vld [vmem:[#allocation5 + $0x3e8] sm:$0xff]  }
  0x82   : > { %2025 = vmatpush3.bf16.msra.mxu0 %v2264_v2  ;;  %v2312_v2 = vld [vmem:[#allocation5 + $0x328] sm:$0xff]  }
  0x83   : > { %2047 = vmatpush3.bf16.msra.mxu1 %v2265_v3  ;;  %2026 = vmatprep.subr.bf16.mxu0 %v2266_v4  ;;  %v2313_v3 = vld [vmem:[#allocation5 + $0x3a8] sm:$0xff]   ;;  %v2314_v4 = vld [vmem:[#allocation5 + $0x360] sm:$0xff]  }
  0x84   : > { %2048 = vmatprep.subr.bf16.mxu1 %v2267_v5  ;;  %v2315_v5 = vld [vmem:[#allocation5 + $0x3e0] sm:$0xff]  }
  0x86   : > { %2027 = vmatpush3.bf16.msra.mxu0 %v2268_v6  ;;  %v2316_v6 = vld [vmem:[#allocation5 + $0x320] sm:$0xff]  }
  0x87   : > { %2049 = vmatpush3.bf16.msra.mxu1 %v2269_v7  ;;  %2056 = vmatprep.subr.bf16.mxu0 %v2270_v16  ;;  %v2317_v7 = vld [vmem:[#allocation5 + $0x3a0] sm:$0xff]   ;;  %v2326_v16 = vld [vmem:[#allocation5 + $0x348] sm:$0xff]  }
  0x88   : > { %2078 = vmatprep.subr.bf16.mxu1 %v2271_v17  ;;  %v2327_v17 = vld [vmem:[#allocation5 + $0x3c8] sm:$0xff]  }
  0x89   : > { %1470 = vmatmul.mubr.bf16.vlgmr.msra.gmra.mxu0 %v1818_v10  ;;  %v2320_v10 = vld [vmem:[#allocation5 + $0x318] sm:$0xff]  }
  0x8a   : > { %1511 = vmatmul.mubr.bf16.vlgmr.msra.gmra.mxu1 %v1820_v14  ;;  %2057 = vmatpush3.bf16.msra.mxu0 %v2272_v18  ;;  %v2324_v14 = vld [vmem:[#allocation5 + $0x310] sm:$0xff]   ;;  %v2328_v18 = vld [vmem:[#allocation5 + $0x308] sm:$0xff]  }
  0x8b   : > { %2079 = vmatpush3.bf16.msra.mxu1 %v2273_v19  ;;  %2058 = vmatprep.subr.bf16.mxu0 %v2274_v20  ;;  %v2329_v19 = vld [vmem:[#allocation5 + $0x388] sm:$0xff]   ;;  %v2330_v20 = vld [vmem:[#allocation5 + $0x340] sm:$0xff]  }
  0x8c   : > { %2080 = vmatprep.subr.bf16.mxu1 %v2275_v21  ;;  %1551 = vmatprep.mubr.bf16.mxu0 %v1823_v53  ;;  %v2331_v21 = vld [vmem:[#allocation5 + $0x3c0] sm:$0xff]  }
  0x8d   : > { %1592 = vmatprep.mubr.bf16.mxu1 %v1825_v55 }
  0x8e   : > { %2059 = vmatpush3.bf16.msra.mxu0 %v2276_v22  ;;  %v2332_v22 = vld [vmem:[#allocation5 + $0x300] sm:$0xff]  }
  0x8f   : > { %2081 = vmatpush3.bf16.msra.mxu1 %v2277_v23  ;;  %2060 = vmatprep.subr.bf16.mxu0 %v2278_v24  ;;  %v2333_v23 = vld [vmem:[#allocation5 + $0x380] sm:$0xff]   ;;  %v241_v24 = vld [vmem:[%s2614_s12 + $0x30] sm:$0xff] }
  0x90   : > { %2082 = vmatprep.subr.bf16.mxu1 %v2279_v25  ;;  %v249_v25 = vld [vmem:[%s2614_s12 + $0x70] sm:$0xff] }
  0x92   : > { %2061 = vmatpush3.bf16.msra.mxu0 %v2280_v26  ;;  %v242_v26 = vld [vmem:[%s2614_s12 + $0x38] sm:$0xff] }
  0x93   : > { %2083 = vmatpush3.bf16.msra.mxu1 %v2281_v27  ;;  %2062 = vmatprep.subr.bf16.mxu0 %v2282_v28  ;;  %v1826_v27 = vcombine.low %v241_v24, %v249_v25  ;;  %v1827_v28 = vcombine.high %v241_v24, %v249_v25 }
  0x94   : > { %2084 = vmatprep.subr.bf16.mxu1 %v2283_v29  ;;  %v250_v29 = vld [vmem:[%s2614_s12 + $0x78] sm:$0xff] }
  0x96   : > { %2063 = vmatpush3.bf16.msra.mxu0 %v2284_v30  ;;  %v1828_v30 = vcombine.low %v242_v26, %v250_v29 }
  0x97   : > { %2085 = vmatpush3.bf16.msra.mxu1 %v2285_v31  ;;  %2064 = vmatprep.subr.bf16.mxu0 %v2286_v32  ;;  %v1829_v31 = vcombine.high %v242_v26, %v250_v29 }
  0x98   : > { %2086 = vmatprep.subr.bf16.mxu1 %v2287_v33 }
  0x9a   : > { %2065 = vmatpush3.bf16.msra.mxu0 %v2288_v34 }
  0x9b   : > { %2087 = vmatpush3.bf16.msra.mxu1 %v2289_v35  ;;  %2066 = vmatprep.subr.bf16.mxu0 %v2290_v36 }
  0x9c   : > { %2088 = vmatprep.subr.bf16.mxu1 %v2291_v37 }
  0x9e   : > { %2067 = vmatpush3.bf16.msra.mxu0 %v2292_v38 }
  0x9f   : > { %2089 = vmatpush3.bf16.msra.mxu1 %v2293_v39  ;;  %2068 = vmatprep.subr.bf16.mxu0 %v2294_v40 }
  0xa0   : > { %2090 = vmatprep.subr.bf16.mxu1 %v2295_v41 }
  0xa2   : > { %2069 = vmatpush3.bf16.msra.mxu0 %v2296_v42 }
  0xa3   : > { %2091 = vmatpush3.bf16.msra.mxu1 %v2297_v43  ;;  %2070 = vmatprep.subr.bf16.mxu0 %v2298_v44 }
  0xa4   : > { %2092 = vmatprep.subr.bf16.mxu1 %v2299_v45 }
  0xa6   : > { %2071 = vmatpush3.bf16.msra.mxu0 %v2300_v46 }
  0xa7   : > { %2093 = vmatpush3.bf16.msra.mxu1 %v2301_v47  ;;  %2100 = vmatprep.subr.bf16.mxu0 %v2302_v56 }
  0xa8   : > { %2122 = vmatprep.subr.bf16.mxu1 %v2303_v57 }
  0xa9   : > { %1552 = vmatmul.mubr.bf16.vlgmr.msra.gmra.mxu0 %v1822_v52 }
  0xaa   : > { %1593 = vmatmul.mubr.bf16.vlgmr.msra.gmra.mxu1 %v1824_v54  ;;  %2101 = vmatpush3.bf16.msra.mxu0 %v2304_v58 }
  0xab   : > { %2123 = vmatpush3.bf16.msra.mxu1 %v2305_v59  ;;  %2102 = vmatprep.subr.bf16.mxu0 %v2306_v60 }
  0xac   : > { %2124 = vmatprep.subr.bf16.mxu1 %v2307_v61  ;;  %1633 = vmatprep.mubr.bf16.mxu0 %v1827_v28  ;;  %v1959_v28 = vld [vmem:[%s2699_s3] ss:$0 sm:$0xff] }
  0xad   : > { %1674 = vmatprep.mubr.bf16.mxu1 %v1829_v31 }
  0xae   : > { %2103 = vmatpush3.bf16.msra.mxu0 %v2308_v62 }
  0xaf   : > { %2125 = vmatpush3.bf16.msra.mxu1 %v2309_v63  ;;  %2104 = vmatprep.subr.bf16.mxu0 %v2310_v0 }
  0xb0   : > { %2126 = vmatprep.subr.bf16.mxu1 %v2311_v1 }
  0xb2   : > { %2105 = vmatpush3.bf16.msra.mxu0 %v2312_v2 }
  0xb3   : > { %2127 = vmatpush3.bf16.msra.mxu1 %v2313_v3  ;;  %2106 = vmatprep.subr.bf16.mxu0 %v2314_v4 }
  0xb4   : > { %2128 = vmatprep.subr.bf16.mxu1 %v2315_v5 }
  0xb6   : > { %2107 = vmatpush3.bf16.msra.mxu0 %v2316_v6 }
  0xb7   : > { %2129 = vmatpush3.bf16.msra.mxu1 %v2317_v7  ;;  %2108 = vmatprep.subr.bf16.mxu0 %v2318_v8 }
  0xb8   : > { %2130 = vmatprep.subr.bf16.mxu1 %v2319_v9 }
  0xba   : > { %2109 = vmatpush3.bf16.msra.mxu0 %v2320_v10 }
  0xbb   : > { %2131 = vmatpush3.bf16.msra.mxu1 %v2321_v11  ;;  %2110 = vmatprep.subr.bf16.mxu0 %v2322_v12 }
  0xbc   : > { %2132 = vmatprep.subr.bf16.mxu1 %v2323_v13 }
  0xbe   : > { %2111 = vmatpush3.bf16.msra.mxu0 %v2324_v14 }
  0xbf   : > { %2133 = vmatpush3.bf16.msra.mxu1 %v2325_v15  ;;  %2112 = vmatprep.subr.bf16.mxu0 %v2326_v16 }
  0xc0   : > { %2134 = vmatprep.subr.bf16.mxu1 %v2327_v17 }
  0xc2   : > { %2113 = vmatpush3.bf16.msra.mxu0 %v2328_v18 }
  0xc3   : > { %2135 = vmatpush3.bf16.msra.mxu1 %v2329_v19  ;;  %2114 = vmatprep.subr.bf16.mxu0 %v2330_v20 }
  0xc4   : > { %2136 = vmatprep.subr.bf16.mxu1 %v2331_v21 }
  0xc6   : > { %2115 = vmatpush3.bf16.msra.mxu0 %v2332_v22  ;;  %v1958_v22 = vld [vmem:[%s2698_s2] ss:$0 sm:$0xff] }
  0xc7   : > { %2137 = vmatpush3.bf16.msra.mxu1 %v2333_v23 }
  0xc9   : > { %1634 = vmatmul.mubr.bf16.vlgmr.msra.gmra.mxu0 %v1826_v27 }
  0xca   : > { %1675 = vmatmul.mubr.bf16.vlgmr.msra.gmra.mxu1 %v1828_v30 }
 0x129   : > { %v1984_v32 = vpop.f32.mrf.mxu0 }
 0x12a   : > { %v2006_v33 = vpop.f32.mrf.mxu1 }
 0x12b   : > { %v1985_v34 = vpop.f32.mrf.mxu0 }
 0x12c   : > { %v2007_v35 = vpop.f32.mrf.mxu1  ;;  %v1986_v49 = vadd.f32 %v1985_v34, %v1984_v32 }
 0x12d   : > { %v1987_v36 = vpop.f32.mrf.mxu0  ;;  %v2008_v50 = vadd.f32 %v2007_v35, %v2006_v33 }
 0x12e   : > { %v2009_v37 = vpop.f32.mrf.mxu1 }
 0x12f   : > { %v1988_v38 = vpop.f32.mrf.mxu0  ;;  %v1431_v54 = vadd.f32 %v2008_v50, %v1986_v49 }
 0x130   : > { %v2010_v40 = vpop.f32.mrf.mxu1  ;;  %v1989_v55 = vadd.f32 %v1988_v38, %v1987_v36 }
 0x131   : > { %v2011_v56 = vadd.f32 %v2010_v40, %v2009_v37 }
 0x133   : > { %v1434_v62 = vadd.f32 %v2011_v56, %v1989_v55 }
 0x149   : > { %v2028_v39 = vpop.f32.mrf.mxu0 }
 0x14a   : > { %v2050_v41 = vpop.f32.mrf.mxu1 }
 0x14b   : > { %v2029_v42 = vpop.f32.mrf.mxu0 }
 0x14c   : > { %v2051_v43 = vpop.f32.mrf.mxu1  ;;  %v2030_v53 = vadd.f32 %v2029_v42, %v2028_v39 }
 0x14d   : > { %v2031_v44 = vpop.f32.mrf.mxu0  ;;  %v2052_v60 = vadd.f32 %v2051_v43, %v2050_v41 }
 0x14e   : > { %v2053_v45 = vpop.f32.mrf.mxu1  ;;  %v1472_v59 = vadd.f32 %v2030_v53, %v1431_v54 }
 0x14f   : > { %v2032_v46 = vpop.f32.mrf.mxu0 }
 0x150   : > { %v2054_v48 = vpop.f32.mrf.mxu1  ;;  %v2033_v61 = vadd.f32 %v2032_v46, %v2031_v44  ;;  %v1513_v2 = vadd.f32 %v2052_v60, %v1472_v59 }
 0x151   : > { %v2055_v4 = vadd.f32 %v2054_v48, %v2053_v45 }
 0x152   : > { %v1475_v3 = vadd.f32 %v2033_v61, %v1434_v62 }
 0x154   : > { %v1516_v10 = vadd.f32 %v2055_v4, %v1475_v3 }
 0x169   : > { %v2072_v47 = vpop.f32.mrf.mxu0 }
 0x16a   : > { %v2094_v51 = vpop.f32.mrf.mxu1 }
 0x16b   : > { %v2073_v52 = vpop.f32.mrf.mxu0 }
 0x16c   : > { %v2095_v57 = vpop.f32.mrf.mxu1  ;;  %v2074_v63 = vadd.f32 %v2073_v52, %v2072_v47 }
 0x16d   : > { %v2075_v58 = vpop.f32.mrf.mxu0  ;;  %v2096_v6 = vadd.f32 %v2095_v57, %v2094_v51 }
 0x16e   : > { %v2097_v0 = vpop.f32.mrf.mxu1  ;;  %v1554_v5 = vadd.f32 %v2074_v63, %v1513_v2 }
 0x16f   : > { %v2076_v1 = vpop.f32.mrf.mxu0 }
 0x170   : > { %v2077_v7 = vadd.f32 %v2076_v1, %v2075_v58  ;;  %v2098_v8 = vpop.f32.mrf.mxu1  ;;  %v1595_v13 = vadd.f32 %v2096_v6, %v1554_v5 }
 0x171   : > { %v2099_v18 = vadd.f32 %v2098_v8, %v2097_v0 }
 0x172   : > { %v1557_v14 = vadd.f32 %v2077_v7, %v1516_v10 }
 0x174   : > { %v1598_v24 = vadd.f32 %v2099_v18, %v1557_v14 }
 0x189   : > { %v2116_v9 = vpop.f32.mrf.mxu0 }
 0x18a   : > { %v2138_v11 = vpop.f32.mrf.mxu1 }
 0x18b   : > { %v2117_v12 = vpop.f32.mrf.mxu0 }
 0x18c   : > { %v2118_v15 = vadd.f32 %v2117_v12, %v2116_v9  ;;  %v2139_v16 = vpop.f32.mrf.mxu1 }
 0x18d   : > { %v2119_v17 = vpop.f32.mrf.mxu0  ;;  %v2140_v20 = vadd.f32 %v2139_v16, %v2138_v11 }
 0x18e   : > { %v1636_v19 = vadd.f32 %v2118_v15, %v1595_v13  ;;  %v2141_v21 = vpop.f32.mrf.mxu1 }
 0x18f   : > { %v2120_v23 = vpop.f32.mrf.mxu0 }
 0x190   : > { %v1677_v25 = vadd.f32 %v2140_v20, %v1636_v19  ;;  %v2121_v26 = vadd.f32 %v2120_v23, %v2119_v17  ;;  %v2142_v27 = vpop.f32.mrf.mxu1 }
 0x191   : > { %v2143_v31 = vadd.f32 %v2142_v27, %v2141_v21 }
 0x192   : > { %v1690_v29 = vmul.f32 %v1958_v22, %v1677_v25  ;;  %v1639_v30 = vadd.f32 %v2121_v26, %v1598_v24 }
 0x194   : > { %v1699_v32 = vadd.f32 %v1959_v28, %v1690_v29  ;;  %v1680_v33 = vadd.f32 %v2143_v31, %v1639_v30 }
 0x196   : > { %v1701_v34 = vmax.f32 %v1699_v32, 0.0  ;;  %v1691_v35 = vmul.f32 %v1958_v22, %v1680_v33 }
 0x198   : > { %1703 = vst [vmem:[%s231_s29] sm:$0xff] %v1701_v34  ;;  %v1700_v36 = vadd.f32 %v1959_v28, %v1691_v35 }
 0x19a   : > { %v1702_v37 = vmax.f32 %v1700_v36, 0.0 }
 0x19c   : > { %1704 = vst [vmem:[%s231_s29 + $0x8] sm:$0xff] %v1702_v37 }
 0x19d   : > { %2401 = shalt.err (!%p2398_p0)
}
 0x19e   : > { %s2402_s12 = scalar_lea.hbm %s2651_s20, 256  ;;  %s2406_s5 = scalar_lea.hbm %s2700_s4, 512 }
 0x19f   : > { %p2403_p5 = scmp.ne.s32.totalorder %s2651_s20, %s2402_s12  ;;  %p2407_p4 = scmp.lt.s32.totalorder %s2651_s20, %s2700_s4 }
 0x1a0   : > { %p2408_p6 = scmp.lt.s32.totalorder %s2406_s5, %s2402_s12 }
 0x1a1   : > { %p2404_p9 = pnand %p2403_p5, %p2716_p11 }
 0x1a2   : > { %p2409_p8 = por %p2408_p6, %p2407_p4 }
 0x1a3   : > { %p2405_p1 = pneg %p2404_p9 }
 0x1a5   : > { %p2410_p3 = pnand %p2409_p8, %p2405_p1 }
 0x1a7   : > { %2413 = shalt.err (!%p2410_p3)
}
 0x1a8   : > { %s2464_s28 = smov 128   ;;  %s2465_s29 = smov 8  }
 0x1a9   : > { %2150 = dma.vmem_to_hbm [thread:$0]  (%p2716_p11), %s2653_s13, 256, %s2651_s20, %s1706_s25, %s2464_s28, %s2464_s28, %s2465_s29  }
 0x1aa PF: > { %s1734_s11 = sand.u32 1, %s2444_s15   ;;  %p2717_p7 = scmp.ne.s32.totalorder %s2706_s22, 0 }
 0x1ab   : > { %p2718_p2 = scmp.ge.s32.totalorder %s2456_s18, 2  ;;  %s1735_s14 = scalar_lea.sflag [#allocation4], %s1734_s11 }
 0x1ad   : > { %p2161_p10 = pnand %p2718_p2, %p2717_p7 }
 0x1af   : > { %p2162_p12 = pneg %p2161_p10 }
 0x1b1   : > { %2439 = dma.done.wait (%p2162_p12), %s1735_s14, 256  }
 0x1b2   : > { %2441 = vsyncadd (%p2162_p12), %s1735_s14, 4294967040  ;;  %p18_p13 = scmp.ge.s32.totalorder %s2545_s27, 4   ;;  %s2719_s15 = smov %s2448_s16 }
 0x1b3   : > { %s2720_s16 = smov %s2452_s17  ;;  %s2721_s17 = smov %s2564_s9 }
 0x1b4   : > { %s2722_s18 = smov %s2545_s27  ;;  %20 = sbr.rel (!%p18_p13) target bundleno = 6 (0x6), region = 85 }
 0x1b9   :  { %1740 = vsyncpa [#allocation3], 1 }
 0x1ba   :  { %1742 = vsyncpa [#allocation3 + $0x1], 1 }
 0x1bb   :  { %1743 = vsyncpa [#allocation6], 1 }
 0x1bc   :  { %1744 = vsyncpa [#allocation4], 1 }
 0x1bd   :  { %1746 = vsyncpa [#allocation4 + $0x1], 1 }

</bundles_post_ra>
